<compile_context>
chip_gen: v5e
topology: v5e:2x2
jax: 0.10.0
libtpu: 0.0.40
codegen_flags: <defaults>
</compile_context>

<pallas_src>
import jax
import jax.numpy as jnp
from jax.experimental import pallas as pl
from jax.experimental.pallas import tpu as pltpu

_LANE = 128
_SUBLANE = 8


def _round_up(x, m):
    return ((x + m - 1) // m) * m


def _vmem_budget_bytes():
    """Generation-aware scoped-VMEM budget for this pallas_call.

    v5e/v6e have 128 MiB physical VMEM, v7x only 64 MiB; keep this kernel's
    working set at <= half of physical and never above 32 MiB so it stays
    inside each generation's scoped default (or a modest raise of it).
    """
    try:
        cap = int(pltpu.get_tpu_info().vmem_capacity_bytes)
    except Exception:
        cap = 64 << 20  # conservative (v7x-sized) fallback
    return min(cap // 2, 32 << 20)


def _pick_block_batch(b_pad8, per_row_bytes, budget_bytes, min_steps=4):
    """Pick the per-step batch tile Bt.

    - Always a multiple of 8 so every block's sublane axis is dense.
    - Small enough that double-buffered I/O plus the in-kernel f32 temps fit
      the generation-aware VMEM budget.
    - Small enough to leave >= min_steps grid steps when the batch allows it,
      so megacore sharding and double-buffered pipelining actually engage
      instead of collapsing the grid to (1,).
    """
    bt_budget = (budget_bytes // max(per_row_bytes, 1)) // _SUBLANE * _SUBLANE
    bt_budget = max(_SUBLANE, bt_budget)
    if b_pad8 >= _SUBLANE * min_steps:
        bt_steps = max(_SUBLANE, (b_pad8 // min_steps) // _SUBLANE * _SUBLANE)
    else:
        bt_steps = b_pad8  # tiny batch: a single dense step is fine
    return max(_SUBLANE, min(bt_budget, bt_steps, b_pad8))


def _make_layernorm_kernel(eps, n_valid, n_pad_lanes):
    inv_n = 1.0 / float(n_valid)
    inv_nm1 = 1.0 / float(max(n_valid - 1, 1))  # unbiased (N-1) divisor
    n_pad = float(n_pad_lanes)

    def kernel(x_ref, g_ref, b_ref, o_ref):
        # x_ref: (Bt, Np) flat block, Np = round_up(C*H*W, 128).
        # g_ref / b_ref: (1, Np) pre-expanded per-channel affine (pad = 0).
        x = x_ref[...].astype(jnp.float32)

        # Per-sample stats (row-wise reductions run on the XLU slot).
        # Pad lanes are zero, so sum(x) is unaffected.
        mean = jnp.sum(x, axis=1, keepdims=True) * inv_n           # (Bt, 1)
        d = x - mean
        ssq = jnp.sum(d * d, axis=1, keepdims=True)                # (Bt, 1)
        if n_pad_lanes:
            # Each zero pad lane contributed (0 - mean)^2; remove analytically.
            ssq = ssq - n_pad * (mean * mean)
        denom = jnp.sqrt(ssq * inv_nm1) + eps                      # std + eps

        # Reciprocal on the EUP (free slot); one Newton step on the tiny
        # (Bt, 1) vector restores near-f32 accuracy at negligible cost.
        inv = pl.reciprocal(denom, approx=True)
        inv = inv * (2.0 - denom * inv)

        g = g_ref[...].astype(jnp.float32)
        b = b_ref[...].astype(jnp.float32)

        # Elementwise hot path: mul, mul, add (no per-element divide).
        o_ref[...] = ((d * inv) * g + b).astype(o_ref.dtype)

    return kernel


def prepare_affine(gamma, beta, spatial_size, dtype=jnp.float32):
    """Pre-expand per-channel affine params to the flat [1, Np] layout.

    Call once and reuse across layer_norm calls — this hoists the jnp.repeat
    (a separate XLA op with ~8*N bytes of HBM traffic) out of the per-call
    path. Stored in the activation dtype to halve resident bytes for bf16.
    """
    C = int(gamma.shape[0])
    N = C * int(spatial_size)
    Np = _round_up(N, _LANE)
    g = jnp.repeat(gamma.astype(dtype), spatial_size)
    b = jnp.repeat(beta.astype(dtype), spatial_size)
    if Np != N:
        g = jnp.pad(g, (0, Np - N))
        b = jnp.pad(b, (0, Np - N))
    return g.reshape(1, Np), b.reshape(1, Np)


def layer_norm(x_nchw, g_flat, b_flat, eps=1e-5):
    """x_nchw: [B, C, H, W]; g_flat, b_flat: [1, Np] from prepare_affine()."""
    B, C, H, W = x_nchw.shape
    N = C * H * W
    Np = int(g_flat.shape[1])
    assert Np == _round_up(N, _LANE), "affine params not prepared for this shape"

    # Flat lane-dense layout: one row per sample, last dim a multiple of 128.
    x = x_nchw.reshape(B, N)
    if Np != N:
        x = jnp.pad(x, ((0, 0), (0, Np - N)))

    itemsize = x.dtype.itemsize
    # Per-row VMEM footprint: double-buffered input + output blocks in x.dtype
    # plus ~3 full-width f32 temps (upcast x, d, pre-cast output) that Mosaic
    # keeps in VMEM/vregs while the body runs.
    per_row_bytes = 4 * Np * itemsize + 3 * Np * 4
    budget = _vmem_budget_bytes()

    # Pad the batch so every block is sublane-dense (multiple of 8 rows);
    # padded rows compute independent garbage stats and are sliced off below.
    Bp8 = _round_up(B, _SUBLANE)
    Bt = _pick_block_batch(Bp8, per_row_bytes, budget)
    Bp = _round_up(B, Bt)
    if Bp != B:
        x = jnp.pad(x, ((0, Bp - B), (0, 0)))
    grid = (Bp // Bt,)

    # Raise the scoped-VMEM limit only when the resident working set needs it,
    # never past the generation-aware budget (v7x has only 64 MiB physical).
    needed = Bt * per_row_bytes + 4 * Np * g_flat.dtype.itemsize + (2 << 20)
    compiler_kwargs = {}
    if needed > (16 << 20):
        compiler_kwargs["vmem_limit_bytes"] = int(min(needed, budget))

    # TODO(synk): for samples too large to fit even a single Bt=8 block within
    # the VMEM budget, switch to a streaming two-pass kernel (inner "arbitrary"
    # grid axis over N chunks accumulating sum/sum-sq, then a normalize pass).

    out = pl.pallas_call(
        _make_layernorm_kernel(eps, N, Np - N),
        out_shape=jax.ShapeDtypeStruct((Bp, Np), x.dtype),
        grid_spec=pltpu.PrefetchScalarGridSpec(
            num_scalar_prefetch=0,
            grid=grid,
            in_specs=[
                pl.BlockSpec((Bt, Np), lambda i: (i, 0)),
                pl.BlockSpec((1, Np), lambda i: (0, 0)),
                pl.BlockSpec((1, Np), lambda i: (0, 0)),
            ],
            out_specs=pl.BlockSpec((Bt, Np), lambda i: (i, 0)),
        ),
        compiler_params=pltpu.CompilerParams(
            dimension_semantics=("parallel",),
            **compiler_kwargs,
        ),
    )(x, g_flat, b_flat)

    return out[:B, :N].reshape(B, C, H, W)


def _reference(x, gamma, beta, eps=1e-5):
    B = x.shape[0]
    xf = x.reshape(B, -1).astype(jnp.float32)
    mean = xf.mean(axis=1)
    # unbiased std (matches torch.Tensor.std default)
    var = jnp.sum((xf - mean[:, None]) ** 2, axis=1) / (xf.shape[1] - 1)
    std = jnp.sqrt(var)
    shape = (B,) + (1,) * (x.ndim - 1)
    y = (x.astype(jnp.float32) - mean.reshape(shape)) / (std.reshape(shape) + eps)
    aff = (1, -1) + (1,) * (x.ndim - 2)
    y = y * gamma.reshape(aff) + beta.reshape(aff)
    return y.astype(x.dtype)


if __name__ == "__main__":
    key = jax.random.PRNGKey(0)
    kx, kg = jax.random.split(key)

    B, C, H, W = 2, 4, 16, 16
    x = jax.random.normal(kx, (B, C, H, W), dtype=jnp.float32)

    # Deterministic parameter init matching nn.Module.__init__:
    #   gamma ~ uniform_() on [0, 1), beta = zeros
    gamma = jax.random.uniform(kg, (C,), dtype=jnp.float32)
    beta = jnp.zeros((C,), dtype=jnp.float32)

    # Hoisted out of the per-call path (cache and reuse across calls).
    g_flat, b_flat = prepare_affine(gamma, beta, H * W, dtype=x.dtype)

    y = layer_norm(x, g_flat, b_flat, eps=1e-5)
    y = jax.block_until_ready(y)

    y_ref = _reference(x, gamma, beta, eps=1e-5)
    assert y.shape == (B, C, H, W)
    assert jnp.allclose(y, y_ref, atol=1e-4, rtol=1e-4), "mismatch vs reference"

    print("KERNEL_OK")
</pallas_src>

<mosaic_0001>
module attributes {stable_mosaic.version = 11 : i64} {
  func.func @kernel(%arg0: i32, %arg1: memref<8x1024xf32, #tpu.memory_space<vmem>>, %arg2: memref<1x1024xf32, #tpu.memory_space<vmem>>, %arg3: memref<1x1024xf32, #tpu.memory_space<vmem>>, %arg4: memref<8x1024xf32, #tpu.memory_space<vmem>>) attributes {dimension_semantics = [#tpu.dimension_semantics<parallel>], iteration_bounds = array<i64: 1>, scalar_prefetch = 0 : i64, scratch_operands = 0 : i64, tpu.core_type = #tpu.core_type<tc>, window_params = [{transform_indices = @transform_0, window_bounds = array<i64: 8, 1024>}, {pipeline_mode = #tpu.pipeline_mode<synchronous>, transform_indices = @transform_1, window_bounds = array<i64: 1, 1024>}, {pipeline_mode = #tpu.pipeline_mode<synchronous>, transform_indices = @transform_2, window_bounds = array<i64: 1, 1024>}, {transform_indices = @transform_3, window_bounds = array<i64: 8, 1024>}]} {
    %c0 = arith.constant 0 : index
    %c0_0 = arith.constant 0 : index
    %0 = vector.load %arg1[%c0, %c0_0] : memref<8x1024xf32, #tpu.memory_space<vmem>>, vector<8x1024xf32>
    %cst = arith.constant dense<0.000000e+00> : vector<8xf32>
    %1 = vector.multi_reduction <add>, %0, %cst [1] : vector<8x1024xf32> to vector<8xf32>
    %2 = vector.shape_cast %1 : vector<8xf32> to vector<8x1xf32>
    %cst_1 = arith.constant 9.765625E-4 : f32
    %3 = vector.broadcast %cst_1 : f32 to vector<8x1xf32>
    %4 = arith.mulf %2, %3 : vector<8x1xf32>
    %5 = vector.broadcast %4 : vector<8x1xf32> to vector<8x1024xf32>
    %6 = arith.subf %0, %5 : vector<8x1024xf32>
    %7 = arith.mulf %6, %6 : vector<8x1024xf32>
    %cst_2 = arith.constant dense<0.000000e+00> : vector<8xf32>
    %8 = vector.multi_reduction <add>, %7, %cst_2 [1] : vector<8x1024xf32> to vector<8xf32>
    %9 = vector.shape_cast %8 : vector<8xf32> to vector<8x1xf32>
    %cst_3 = arith.constant 9.77517105E-4 : f32
    %10 = vector.broadcast %cst_3 : f32 to vector<8x1xf32>
    %11 = arith.mulf %9, %10 : vector<8x1xf32>
    %12 = math.sqrt %11 : vector<8x1xf32>
    %cst_4 = arith.constant 9.99999974E-6 : f32
    %13 = vector.broadcast %cst_4 : f32 to vector<8x1xf32>
    %14 = arith.addf %12, %13 : vector<8x1xf32>
    %15 = tpu.reciprocal %14 {approx = true} : vector<8x1xf32> -> vector<8x1xf32>
    %16 = arith.mulf %14, %15 : vector<8x1xf32>
    %cst_5 = arith.constant 2.000000e+00 : f32
    %17 = vector.broadcast %cst_5 : f32 to vector<8x1xf32>
    %18 = arith.subf %17, %16 : vector<8x1xf32>
    %19 = arith.mulf %15, %18 : vector<8x1xf32>
    %c0_6 = arith.constant 0 : index
    %c0_7 = arith.constant 0 : index
    %20 = vector.load %arg2[%c0_6, %c0_7] : memref<1x1024xf32, #tpu.memory_space<vmem>>, vector<1x1024xf32>
    %c0_8 = arith.constant 0 : index
    %c0_9 = arith.constant 0 : index
    %21 = vector.load %arg3[%c0_8, %c0_9] : memref<1x1024xf32, #tpu.memory_space<vmem>>, vector<1x1024xf32>
    %22 = vector.broadcast %19 : vector<8x1xf32> to vector<8x1024xf32>
    %23 = arith.mulf %6, %22 : vector<8x1024xf32>
    %24 = vector.broadcast %20 : vector<1x1024xf32> to vector<8x1024xf32>
    %25 = arith.mulf %23, %24 : vector<8x1024xf32>
    %26 = vector.broadcast %21 : vector<1x1024xf32> to vector<8x1024xf32>
    %27 = arith.addf %25, %26 : vector<8x1024xf32>
    %c0_10 = arith.constant 0 : index
    %c0_11 = arith.constant 0 : index
    %28 = vector.load %arg4[%c0_10, %c0_11] : memref<8x1024xf32, #tpu.memory_space<vmem>>, vector<8x1024xf32>
    tpu.vector_store %arg4[%c0_10, %c0_11], %27 {strides = array<i32>} : memref<8x1024xf32, #tpu.memory_space<vmem>>, vector<8x1024xf32>,
    return
  }
  func.func @transform_0(%arg0: i32) -> (i32, i32) {
    %c0_i32 = arith.constant 0 : i32
    %c0_i32_0 = arith.constant 0 : i32
    return %arg0, %c0_i32 : i32, i32
  }
  func.func @transform_1(%arg0: i32) -> (i32, i32) {
    %c0_i32 = arith.constant 0 : i32
    %c0_i32_0 = arith.constant 0 : i32
    %c0_i32_1 = arith.constant 0 : i32
    return %c0_i32, %c0_i32_0 : i32, i32
  }
  func.func @transform_2(%arg0: i32) -> (i32, i32) {
    %c0_i32 = arith.constant 0 : i32
    %c0_i32_0 = arith.constant 0 : i32
    %c0_i32_1 = arith.constant 0 : i32
    return %c0_i32, %c0_i32_0 : i32, i32
  }
  func.func @transform_3(%arg0: i32) -> (i32, i32) {
    %c0_i32 = arith.constant 0 : i32
    %c0_i32_0 = arith.constant 0 : i32
    return %arg0, %c0_i32 : i32, i32
  }
}

</mosaic_0001>

<bundles_post_ra>
// kernel: tpu_custom_call.1
= control target key start
LH: loop header
LB: loop body
LE: loop exit
PB: predicated region body
PF: predicated region fallthrough
CT: control target
= control target key end

     0   :  { %8 = vsyncpa [#allocation3], 0  ;;  %s349_s0 = inlined_call_operand.hbm [shape: f32[8,1024], index: 0, kind: input, shape index: {}]   ;;  %s350_s1 = inlined_call_operand.hbm [shape: f32[1,1024], index: 1, kind: input, shape index: {}]   ;;  %s351_s2 = inlined_call_operand.hbm [shape: f32[1,1024], index: 2, kind: input, shape index: {}]   ;;  %s352_s3 = inlined_call_operand.hbm [shape: f32[8,1024], index: 3, kind: output, shape index: {}]  }
   0x1   :  { %9 = vsyncpa [#allocation6], 0  ;;  %s27_s14 = sshll.u32 %s350_s1, 4  ;;  %s28_s14 = int_to_ptr.hbm [resolvable:$true] %s27_s14 }
   0x2   :  { %10 = vsyncpa [#allocation4], 0  ;;  %s313_s15 = smov [#allocation5]   ;;  %s16_s19 = sshll.u32 %s349_s0, 4  ;;  %s17_s19 = int_to_ptr.hbm [resolvable:$true] %s16_s19 }
   0x3   :  { %s29_s16 = sshll.u32 %s313_s15, 4  ;;  %s314_s20 = smov [#allocation2]   ;;  %s30_s16 = int_to_ptr.vmem [resolvable:$true] %s29_s16 }
   0x4   :  { %32 = dma.hbm_to_vmem [thread:$0]  %s28_s14, 128, %s30_s16, [#allocation6]  }
   0x5   :  { %s18_s21 = sshll.u32 %s314_s20, 4  ;;  %s38_s24 = sshll.u32 %s351_s2, 4  ;;  %s19_s21 = int_to_ptr.vmem [resolvable:$true] %s18_s21  ;;  %s39_s24 = int_to_ptr.hbm [resolvable:$true] %s38_s24 }
   0x6   :  { %21 = dma.hbm_to_vmem [thread:$0]  %s17_s19, 1024, %s19_s21, [#allocation3]  }
   0x7   :  { %s315_s1 = smov [#allocation7]  }
   0x8   :  { %s40_s25 = sshll.u32 %s315_s1, 4  ;;  %s41_s25 = int_to_ptr.vmem [resolvable:$true] %s40_s25 }
   0x9   :  { %43 = dma.hbm_to_vmem [thread:$0]  %s39_s24, 128, %s41_s25, [#allocation6]  }
   0xa   :  { %307 = dma.done.wait [#allocation3], 1024  }
   0xb   :  { %308 = vsyncadd [#allocation3], 4294966272 }
   0xc   :  { %309 = dma.done.wait [#allocation6], 256  }
   0xd   :  { %310 = vsyncadd [#allocation6], 4294967040  ;;  %v56_v0 = vld [vmem:[#allocation2] sm:$0xff]  ;;  %v57_v1 = vld [vmem:[#allocation2 + $0x8] sm:$0xff]  ;;  %s316_s0 = smov [#allocation8]   ;;  %s192_s28 = sshll.u32 %s352_s3, 4  ;;  %s193_s28 = int_to_ptr.hbm [resolvable:$true] %s192_s28 }
   0xe   :  { %v58_v2 = vld [vmem:[#allocation2 + $0x10] sm:$0xff]  ;;  %v64_v3 = vadd.f32 %v57_v1, %v56_v0  ;;  %v59_v4 = vld [vmem:[#allocation2 + $0x18] sm:$0xff]  ;;  %v60_v6 = vld [vmem:[#allocation2 + $0x20] sm:$0xff]  ;;  %s190_s2 = sshll.u32 %s316_s0, 4  ;;  %s191_s2 = int_to_ptr.vmem [resolvable:$true] %s190_s2 }
   0xf   :  { %v61_v8 = vld [vmem:[#allocation2 + $0x28] sm:$0xff]  ;;  %v62_v10 = vld [vmem:[#allocation2 + $0x30] sm:$0xff]  ;;  %v63_v12 = vld [vmem:[#allocation2 + $0x38] sm:$0xff] }
  0x10   :  { %v65_v5 = vadd.f32 %v64_v3, %v58_v2  ;;  %v117_v54 = vld [vmem:[#allocation5] sm:$0xff]  ;;  %v118_v56 = vld [vmem:[#allocation7] sm:$0xff] }
  0x11   :  { %v128_v58 = vperm.slane %v117_v54, 0  ;;  %v129_v59 = vperm.slane %v117_v54, 1  ;;  %v130_v60 = vperm.slane %v117_v54, 2  ;;  %v131_v61 = vperm.slane %v117_v54, 3 }
  0x12   :  { %v66_v7 = vadd.f32 %v65_v5, %v59_v4  ;;  %v132_v62 = vperm.slane %v117_v54, 4  ;;  %v133_v63 = vperm.slane %v117_v54, 5  ;;  %v153_v3 = vperm.slane %v118_v56, 0 }
  0x13   :  { %v155_v5 = vperm.slane %v118_v56, 2 }
  0x14   :  { %v67_v9 = vadd.f32 %v66_v7, %v60_v6  ;;  %v157_v7 = vperm.slane %v118_v56, 4 }
  0x16   :  { %v68_v11 = vadd.f32 %v67_v9, %v61_v8 }
  0x18   :  { %v69_v13 = vadd.f32 %v68_v11, %v62_v10 }
  0x1a   :  { %v70_v14 = vadd.f32 %v69_v13, %v63_v12 }
  0x1c   :  { %71 = vadd.xlane.f32.xlu0 %v70_v14 }
  0x8f   :  { %v72_v15 = vpop.xlane.xlu0 %71 }
  0x90   :  { %v73_v16 = vmul.f32 0.0009765625, %v72_v15 }
  0x92   :  { %v74_v17 = vsub.f32 %v56_v0, %v73_v16  ;;  %v75_v18 = vsub.f32 %v57_v1, %v73_v16  ;;  %v76_v19 = vsub.f32 %v58_v2, %v73_v16  ;;  %v77_v20 = vsub.f32 %v59_v4, %v73_v16 }
  0x93   :  { %v78_v23 = vsub.f32 %v60_v6, %v73_v16  ;;  %v79_v26 = vsub.f32 %v61_v8, %v73_v16  ;;  %v80_v29 = vsub.f32 %v62_v10, %v73_v16  ;;  %v81_v32 = vsub.f32 %v63_v12, %v73_v16 }
  0x94   :  { %v82_v21 = vmul.f32 %v74_v17, %v74_v17  ;;  %v83_v22 = vmul.f32 %v75_v18, %v75_v18  ;;  %v84_v24 = vmul.f32 %v76_v19, %v76_v19  ;;  %v85_v27 = vmul.f32 %v77_v20, %v77_v20 }
  0x95   :  { %v86_v30 = vmul.f32 %v78_v23, %v78_v23  ;;  %v87_v33 = vmul.f32 %v79_v26, %v79_v26  ;;  %v88_v35 = vmul.f32 %v80_v29, %v80_v29  ;;  %v89_v37 = vmul.f32 %v81_v32, %v81_v32 }
  0x96   :  { %v90_v25 = vadd.f32 %v83_v22, %v82_v21  ;;  %v134_v1 = vperm.slane %v117_v54, 6  ;;  %v135_v2 = vperm.slane %v117_v54, 7  ;;  %v154_v4 = vperm.slane %v118_v56, 1 }
  0x97   :  { %v156_v6 = vperm.slane %v118_v56, 3 }
  0x98   :  { %v91_v28 = vadd.f32 %v90_v25, %v84_v24 }
  0x9a   :  { %v92_v31 = vadd.f32 %v91_v28, %v85_v27  ;;  %v158_v28 = vperm.slane %v118_v56, 5 }
  0x9c   :  { %v93_v34 = vadd.f32 %v92_v31, %v86_v30  ;;  %v159_v30 = vperm.slane %v118_v56, 6 }
  0x9e   :  { %v94_v36 = vadd.f32 %v93_v34, %v87_v33 }
  0xa0   :  { %v95_v38 = vadd.f32 %v94_v36, %v88_v35 }
  0xa2   :  { %v96_v39 = vadd.f32 %v95_v38, %v89_v37 }
  0xa4   :  { %97 = vadd.xlane.f32.xlu0 %v96_v39 }
 0x117   :  { %v98_v40 = vpop.xlane.xlu0 %97 }
 0x118   :  { %v99_v41 = vmul.f32 0.0009775171, %v98_v40 }
 0x11a   :  { %207 = vrsqrt.f32 %v99_v41  ;;  %vm107_vm0 = vcmp.eq.f32.partialorder %v99_v41, inf  ;;  %v110_v49 = vand.u32 2147483648, %v99_v41  ;;  %vm109_vm1 = vcmp.eq.f32.partialorder %v99_v41, 0.0 }
 0x120   :  { %v208_v42 = vpop.eup %207 }
 0x121   :  { %v101_v43 = vmul.f32 %v208_v42, %v99_v41 }
 0x123   :  { %v102_v44 = vmul.f32 %v208_v42, %v101_v43 }
 0x125   :  { %v103_v45 = vmul.f32 0.5, %v102_v44 }
 0x127   :  { %v104_v46 = vsub.f32 1.5, %v103_v45 }
 0x129   :  { %v105_v47 = vmul.f32 %v208_v42, %v104_v46 }
 0x12b   :  { %v106_v48 = vmul.f32 %v105_v47, %v99_v41 }
 0x12d   :  { %v108_v50 = vsel %vm107_vm0, %v99_v41, %v106_v48 }
 0x12e   :  { %v111_v51 = vsel %vm109_vm1, %v110_v49, %v108_v50 }
 0x12f   :  { %v112_v52 = vadd.f32 1e-05, %v111_v51 }
 0x131   :  { %209 = vrcp.f32 %v112_v52 }
 0x137   :  { %v210_v53 = vpop.eup %209 }
 0x138   :  { %v114_v55 = vmul.f32 %v210_v53, %v112_v52 }
 0x13a   :  { %v115_v57 = vsub.f32 2.0, %v114_v55 }
 0x13c   :  { %v116_v0 = vmul.f32 %v210_v53, %v115_v57 }
 0x13e   :  { %v119_v8 = vmul.f32 %v116_v0, %v74_v17  ;;  %v120_v9 = vmul.f32 %v116_v0, %v75_v18  ;;  %v121_v10 = vmul.f32 %v116_v0, %v76_v19  ;;  %v122_v11 = vmul.f32 %v116_v0, %v77_v20 }
 0x13f   :  { %v123_v12 = vmul.f32 %v116_v0, %v78_v23  ;;  %v124_v13 = vmul.f32 %v116_v0, %v79_v26  ;;  %v125_v14 = vmul.f32 %v116_v0, %v80_v29  ;;  %v126_v15 = vmul.f32 %v116_v0, %v81_v32 }
 0x140   :  { %v144_v16 = vmul.f32 %v128_v58, %v119_v8  ;;  %v145_v21 = vmul.f32 %v129_v59, %v120_v9  ;;  %v146_v22 = vmul.f32 %v130_v60, %v121_v10  ;;  %v147_v24 = vmul.f32 %v131_v61, %v122_v11 }
 0x141   :  { %v148_v25 = vmul.f32 %v132_v62, %v123_v12  ;;  %v149_v27 = vmul.f32 %v133_v63, %v124_v13  ;;  %v150_v31 = vmul.f32 %v134_v1, %v125_v14  ;;  %v151_v17 = vmul.f32 %v135_v2, %v126_v15 }
 0x142   :  { %v169_v33 = vadd.f32 %v153_v3, %v144_v16  ;;  %v170_v34 = vadd.f32 %v154_v4, %v145_v21  ;;  %v171_v35 = vadd.f32 %v155_v5, %v146_v22  ;;  %v160_v18 = vperm.slane %v118_v56, 7 }
 0x143   :  { %v172_v19 = vadd.f32 %v156_v6, %v147_v24  ;;  %v173_v20 = vadd.f32 %v157_v7, %v148_v25  ;;  %v174_v23 = vadd.f32 %v158_v28, %v149_v27  ;;  %v175_v26 = vadd.f32 %v159_v30, %v150_v31 }
 0x144   :  { %177 = vst [vmem:[#allocation8] sm:$0xff] %v169_v33  ;;  %v176_v29 = vadd.f32 %v160_v18, %v151_v17 }
 0x145   :  { %178 = vst [vmem:[#allocation8 + $0x8] sm:$0xff] %v170_v34 }
 0x146   :  { %179 = vst [vmem:[#allocation8 + $0x10] sm:$0xff] %v171_v35 }
 0x147   :  { %180 = vst [vmem:[#allocation8 + $0x18] sm:$0xff] %v172_v19 }
 0x148   :  { %181 = vst [vmem:[#allocation8 + $0x20] sm:$0xff] %v173_v20 }
 0x149   :  { %182 = vst [vmem:[#allocation8 + $0x28] sm:$0xff] %v174_v23 }
 0x14a   :  { %183 = vst [vmem:[#allocation8 + $0x30] sm:$0xff] %v175_v26 }
 0x14b   :  { %184 = vst [vmem:[#allocation8 + $0x38] sm:$0xff] %v176_v29 }
 0x14c   :  { %195 = dma.vmem_to_hbm [thread:$0]  %s191_s2, 1024, %s193_s28, [#allocation4]  }
 0x14d   :  { %311 = dma.done.wait [#allocation4], 1024  }
 0x14e   :  { %312 = vsyncadd [#allocation4], 4294966272 }
 0x14f   :  { %200 = vsyncpa [#allocation3], 1 }
 0x150   :  { %201 = vsyncpa [#allocation6], 1 }
 0x151   :  { %202 = vsyncpa [#allocation4], 1 }

</bundles_post_ra>
